<compile_context>
chip_gen: v7x
topology: tpu7x:2x2x1
jax: 0.10.0
libtpu: 0.0.40
codegen_flags: <defaults>
</compile_context>

<pallas_src>
import functools

import jax
import jax.numpy as jnp
from jax import lax
from jax.experimental import pallas as pl
from jax.experimental.pallas import tpu as pltpu  # noqa: F401  (TPU backend; defaults used)

# ---------------- configuration (small, consistent with the module) ----------------
B = 2          # batch
L = 8          # sequence length
BOTTLE = 16    # bottle_neck (input dim of the attention block)
D_MODEL = 32   # d_model
N_HEAD = 2
D_K = 16
D_V = 16
EPS = 1e-5     # nn.LayerNorm default eps
MASK_FILL = -1e32  # safe in f32; would overflow if cast to bf16/fp16


# ================================ fused kernel ================================

def _encoder_layer_kernel(xd_ref, xs_ref, mask_ref,
                          wqk_ref, bqk_ref, wv_ref, bv_ref,
                          fc1w_ref, fc1b_ref,
                          w1_ref, b1_ref, w2_ref, b2_ref, g_ref, beta_ref,
                          dyn_ref, attn_ref,
                          *, n_head, d_k, d_v, batch, seq, d_model):
    """Single-step kernel: everything resident in VMEM.

    xd/xs:  (B*L, BOTTLE) dynamic / static inputs
    mask:   (B*L, 1)      non_pad_mask
    wqk:    (BOTTLE, 2*H*d_k)  LN1/LN2-folded, temperature-folded Wq || Wk
    wv:     (BOTTLE, H*d_v)    LN3-folded Wv
    fc1w/b: attention output projection
    w1..beta: pff_n1 (Conv1d k=1 -> tanh -> Conv1d k=1 -> +res -> LN)
    dyn:    (B*L, d_model) output
    attn:   (H*B*L, L)     attention probs (head-major, reshaped wrapper-side)
    """

    def norm(x):  # LayerNorm without affine (affine folded into projections)
        mu = jnp.mean(x, axis=-1, keepdims=True)
        var = jnp.mean((x - mu) ** 2, axis=-1, keepdims=True)
        return (x - mu) * lax.rsqrt(var + EPS)

    xdn = norm(xd_ref[...])                       # (B*L, BOTTLE)
    xsn = norm(xs_ref[...])                       # (B*L, BOTTLE)

    # One wide projection for Q||K and one for V (temperature already folded into Wq).
    qk = jnp.dot(xdn, wqk_ref[...], preferred_element_type=jnp.float32) + bqk_ref[...]
    v = jnp.dot(xsn, wv_ref[...], preferred_element_type=jnp.float32) + bv_ref[...]

    fc1w = fc1w_ref[...]                          # (H*d_v, d_model)
    fc1b = fc1b_ref[...]                          # (1, d_model)

    row = lax.broadcasted_iota(jnp.int32, (seq, seq), 0)
    col = lax.broadcasted_iota(jnp.int32, (seq, seq), 1)
    diag = row == col                             # positions masked out (diag_mask_flag=True)

    qk_w = n_head * d_k
    probs_hb = [[None] * batch for _ in range(n_head)]
    dyn_rows = []
    for b in range(batch):                        # tiny static loops (B=H=2) — fully unrolled
        r0 = b * seq
        qb = qk[r0:r0 + seq, :qk_w]               # (L, H*d_k)
        kb = qk[r0:r0 + seq, qk_w:]               # (L, H*d_k)
        vb = v[r0:r0 + seq, :]                    # (L, H*d_v)
        acc = jnp.zeros((seq, d_model), jnp.float32)
        for h in range(n_head):
            qh = qb[:, h * d_k:(h + 1) * d_k]
            kh = kb[:, h * d_k:(h + 1) * d_k]
            vh = vb[:, h * d_v:(h + 1) * d_v]
            # scores = q @ k^T (temperature folded into Wq); NT matmul, no transpose op.
            s = lax.dot_general(qh, kh, (((1,), (1,)), ((), ())),
                                preferred_element_type=jnp.float32)
            s = jnp.where(diag, jnp.float32(MASK_FILL), s)
            # masked softmax (memory_efficient == masked_fill + softmax).
            # NOTE: if a row were fully masked (only possible for L==1), this becomes
            # uniform rather than erroring — same behavior as the reference.
            m = jnp.max(s, axis=-1, keepdims=True)
            e = jnp.exp(s - m)
            p = e / jnp.sum(e, axis=-1, keepdims=True)
            probs_hb[h][b] = p
            pv = jnp.dot(p, vh, preferred_element_type=jnp.float32)
            # accumulate fc1 contribution per head: avoids head concatenation / lane shuffles
            acc = acc + jnp.dot(pv, fc1w[h * d_v:(h + 1) * d_v, :],
                                preferred_element_type=jnp.float32)
        dyn_rows.append(acc + fc1b)

    dyn_attn = jnp.concatenate(dyn_rows, axis=0)  # (B*L, d_model)

    # Single batched store of all attention probabilities (head-major ordering).
    attn_ref[...] = jnp.concatenate(
        [probs_hb[h][b] for h in range(n_head) for b in range(batch)], axis=0)

    # ---- pff_n1 fused: (Conv1d k=1 -> tanh -> Conv1d k=1) + residual + LayerNorm ----
    mask = mask_ref[...]                          # (B*L, 1)
    x = dyn_attn * mask
    h1 = jnp.tanh(jnp.dot(x, w1_ref[...], preferred_element_type=jnp.float32) + b1_ref[...])
    y = jnp.dot(h1, w2_ref[...], preferred_element_type=jnp.float32) + b2_ref[...] + x
    mu = jnp.mean(y, axis=-1, keepdims=True)
    var = jnp.mean((y - mu) ** 2, axis=-1, keepdims=True)
    y = (y - mu) * lax.rsqrt(var + EPS) * g_ref[...] + beta_ref[...]
    dyn_ref[...] = y * mask


# ================================ wrapper ================================

def encoder_layer(dynamic, static, slf_attn_mask, non_pad_mask, p):
    # slf_attn_mask is ignored (MHA builds & uses its own diag mask; mask=None).
    # pff_n2(static) is computed-then-discarded in the PyTorch code -> skipped entirely.
    del slf_attn_mask
    Bb, Ll, bottle = dynamic.shape
    d_model = p["fc1_w"].shape[1]
    temp = float(D_K) ** 0.5

    # Fold LN affine params (+ softmax temperature) into the projection weights.
    #   LN(x; g, b) @ W == norm(x) @ (diag(g) W) + b @ W
    wq = (p["w_qs"] * p["ln1_g"].reshape(-1, 1)) / temp
    bq = (p["ln1_b"] @ p["w_qs"]) / temp
    wk = p["w_ks"] * p["ln2_g"].reshape(-1, 1)
    bk = p["ln2_b"] @ p["w_ks"]
    wv = p["w_vs"] * p["ln3_g"].reshape(-1, 1)
    bv = p["ln3_b"] @ p["w_vs"]
    wqk = jnp.concatenate([wq, wk], axis=1)       # (BOTTLE, 2*H*D_K)
    bqk = jnp.concatenate([bq, bk], axis=1)       # (1, 2*H*D_K)

    # Pack batch*seq onto sublanes (lane/sublane-dense slabs).
    xd = dynamic.reshape(Bb * Ll, bottle)
    xs = static.reshape(Bb * Ll, bottle)
    mask = non_pad_mask.reshape(Bb * Ll, 1)

    kernel = functools.partial(_encoder_layer_kernel, n_head=N_HEAD, d_k=D_K, d_v=D_V,
                               batch=Bb, seq=Ll, d_model=d_model)

    # Single pallas_call, no grid: all operands mapped fully into VMEM (<100 KiB total).
    dyn_flat, attn_flat = pl.pallas_call(
        kernel,
        out_shape=(jax.ShapeDtypeStruct((Bb * Ll, d_model), jnp.float32),
                   jax.ShapeDtypeStruct((N_HEAD * Bb * Ll, Ll), jnp.float32)),
    )(xd, xs, mask, wqk, bqk, wv, bv,
      p["fc1_w"], p["fc1_b"],
      p["p1_w1"], p["p1_b1"], p["p1_w2"], p["p1_b2"], p["p1_g"], p["p1_beta"])

    dyn_out = dyn_flat.reshape(Bb, Ll, d_model)
    # (H*B*L, L) -> (H*B, L, L): same head-major ordering as PyTorch's view(-1, L, d_k)
    attn = attn_flat.reshape(N_HEAD * Bb, Ll, Ll)
    return dyn_out, static, attn


# ================================ reference (pure JAX) ================================

def ref_encoder_layer(dyn, stat, non_pad_mask, p):
    def ln(x, g, b):
        mu = x.mean(-1, keepdims=True)
        var = ((x - mu) ** 2).mean(-1, keepdims=True)
        return (x - mu) * lax.rsqrt(var + EPS) * g + b

    q = ln(dyn, p["ln1_g"], p["ln1_b"])
    k = ln(dyn, p["ln2_g"], p["ln2_b"])
    v = ln(stat, p["ln3_g"], p["ln3_b"])
    Bb, Ll, _ = dyn.shape
    qh = (q @ p["w_qs"]).reshape(Bb, Ll, N_HEAD, D_K).transpose(2, 0, 1, 3)
    kh = (k @ p["w_ks"]).reshape(Bb, Ll, N_HEAD, D_K).transpose(2, 0, 1, 3)
    vh = (v @ p["w_vs"]).reshape(Bb, Ll, N_HEAD, D_V).transpose(2, 0, 1, 3)
    scores = jnp.einsum("hbqd,hbkd->hbqk", qh, kh) / (float(D_K) ** 0.5)
    scores = jnp.where(jnp.eye(Ll, dtype=bool), MASK_FILL, scores)
    probs = jax.nn.softmax(scores, axis=-1)
    attn = probs.reshape(N_HEAD * Bb, Ll, Ll)
    dyn_o = jnp.einsum("hbqk,hbkd->bqhd", probs, vh).reshape(Bb, Ll, N_HEAD * D_V)
    dyn_o = dyn_o @ p["fc1_w"] + p["fc1_b"]

    x = dyn_o * non_pad_mask
    h = jnp.tanh(x @ p["p1_w1"] + p["p1_b1"])
    y = h @ p["p1_w2"] + p["p1_b2"] + x
    y = ln(y, p["p1_g"], p["p1_beta"])
    dyn_final = y * non_pad_mask
    return dyn_final, stat, attn


# ================================ setup ================================

def init_params(key):
    ks = jax.random.split(key, 12)
    std_qk = (2.0 / (D_MODEL + D_K)) ** 0.5
    std_v = (2.0 / (D_MODEL + D_V)) ** 0.5
    f32 = jnp.float32
    # NOTE: fc2 and pff_n2 parameters are omitted — their outputs are discarded by the
    # original forward pass, so they never influence the returned values.
    p = {
        "ln1_g": jnp.ones((1, BOTTLE), f32), "ln1_b": jnp.zeros((1, BOTTLE), f32),
        "ln2_g": jnp.ones((1, BOTTLE), f32), "ln2_b": jnp.zeros((1, BOTTLE), f32),
        "ln3_g": jnp.ones((1, BOTTLE), f32), "ln3_b": jnp.zeros((1, BOTTLE), f32),
        "w_qs": std_qk * jax.random.normal(ks[0], (BOTTLE, N_HEAD * D_K), f32),
        "w_ks": std_qk * jax.random.normal(ks[1], (BOTTLE, N_HEAD * D_K), f32),
        "w_vs": std_v * jax.random.normal(ks[2], (BOTTLE, N_HEAD * D_V), f32),
        "fc1_w": 0.05 * jax.random.normal(ks[3], (N_HEAD * D_V, D_MODEL), f32),
        "fc1_b": 0.01 * jax.random.normal(ks[4], (1, D_MODEL), f32),
        # pff_n1: [d_model, d_model, d_model], residual=True, layer_norm=True
        "p1_w1": 0.05 * jax.random.normal(ks[5], (D_MODEL, D_MODEL), f32),
        "p1_b1": 0.01 * jax.random.normal(ks[6], (1, D_MODEL), f32),
        "p1_w2": 0.05 * jax.random.normal(ks[7], (D_MODEL, D_MODEL), f32),
        "p1_b2": 0.01 * jax.random.normal(ks[8], (1, D_MODEL), f32),
        "p1_g": jnp.ones((1, D_MODEL), f32), "p1_beta": jnp.zeros((1, D_MODEL), f32),
    }
    return p


if __name__ == "__main__":
    key = jax.random.PRNGKey(0)
    kp, kd, ks_ = jax.random.split(key, 3)
    params = init_params(kp)

    dynamic = jax.random.normal(kd, (B, L, BOTTLE), jnp.float32)
    static = jax.random.normal(ks_, (B, L, BOTTLE), jnp.float32)
    slf_attn_mask = jnp.ones((B, L, L), jnp.float32)  # ignored by the forward pass
    lengths = jnp.array([L, L - 2], jnp.int32)
    non_pad_mask = (jnp.arange(L)[None, :] < lengths[:, None]).astype(jnp.float32)[..., None]

    fwd = jax.jit(encoder_layer)
    dyn_out, stat_out, attn = jax.block_until_ready(
        fwd(dynamic, static, slf_attn_mask, non_pad_mask, params))

    ref_dyn, ref_stat, ref_attn = ref_encoder_layer(dynamic, static, non_pad_mask, params)
    assert dyn_out.shape == (B, L, D_MODEL)
    assert stat_out.shape == (B, L, BOTTLE)
    assert attn.shape == (N_HEAD * B, L, L)
    assert jnp.allclose(dyn_out, ref_dyn, atol=1e-3, rtol=1e-3)
    assert jnp.allclose(stat_out, ref_stat, atol=1e-5, rtol=1e-5)
    assert jnp.allclose(attn, ref_attn, atol=1e-3, rtol=1e-3)

    print("KERNEL_OK")
</pallas_src>

<mosaic_0001>
module attributes {stable_mosaic.version = 11 : i64} {
  func.func @_encoder_layer_kernel(%arg0: memref<16x16xf32, #tpu.memory_space<vmem>>, %arg1: memref<16x16xf32, #tpu.memory_space<vmem>>, %arg2: memref<16x1xf32, #tpu.memory_space<vmem>>, %arg3: memref<16x64xf32, #tpu.memory_space<vmem>>, %arg4: memref<1x64xf32, #tpu.memory_space<vmem>>, %arg5: memref<16x32xf32, #tpu.memory_space<vmem>>, %arg6: memref<1x32xf32, #tpu.memory_space<vmem>>, %arg7: memref<32x32xf32, #tpu.memory_space<vmem>>, %arg8: memref<1x32xf32, #tpu.memory_space<vmem>>, %arg9: memref<32x32xf32, #tpu.memory_space<vmem>>, %arg10: memref<1x32xf32, #tpu.memory_space<vmem>>, %arg11: memref<32x32xf32, #tpu.memory_space<vmem>>, %arg12: memref<1x32xf32, #tpu.memory_space<vmem>>, %arg13: memref<1x32xf32, #tpu.memory_space<vmem>>, %arg14: memref<1x32xf32, #tpu.memory_space<vmem>>, %arg15: memref<16x32xf32, #tpu.memory_space<vmem>>, %arg16: memref<32x8xf32, #tpu.memory_space<vmem>>) attributes {dimension_semantics = [], scalar_prefetch = 0 : i64, scratch_operands = 0 : i64, tpu.core_type = #tpu.core_type<tc>} {
    %c0 = arith.constant 0 : index
    %c0_0 = arith.constant 0 : index
    %0 = vector.load %arg0[%c0, %c0_0] : memref<16x16xf32, #tpu.memory_space<vmem>>, vector<16x16xf32>
    %cst = arith.constant dense<0.000000e+00> : vector<16xf32>
    %1 = vector.multi_reduction <add>, %0, %cst [1] : vector<16x16xf32> to vector<16xf32>
    %2 = vector.shape_cast %1 : vector<16xf32> to vector<16x1xf32>
    %cst_1 = arith.constant 1.600000e+01 : f32
    %3 = vector.broadcast %cst_1 : f32 to vector<16x1xf32>
    %4 = arith.divf %2, %3 : vector<16x1xf32>
    %5 = vector.broadcast %4 : vector<16x1xf32> to vector<16x16xf32>
    %6 = arith.subf %0, %5 : vector<16x16xf32>
    %7 = arith.mulf %6, %6 : vector<16x16xf32>
    %cst_2 = arith.constant dense<0.000000e+00> : vector<16xf32>
    %8 = vector.multi_reduction <add>, %7, %cst_2 [1] : vector<16x16xf32> to vector<16xf32>
    %9 = vector.shape_cast %8 : vector<16xf32> to vector<16x1xf32>
    %cst_3 = arith.constant 1.600000e+01 : f32
    %10 = vector.broadcast %cst_3 : f32 to vector<16x1xf32>
    %11 = arith.divf %9, %10 : vector<16x1xf32>
    %12 = vector.broadcast %4 : vector<16x1xf32> to vector<16x16xf32>
    %13 = arith.subf %0, %12 : vector<16x16xf32>
    %cst_4 = arith.constant 9.99999974E-6 : f32
    %14 = vector.broadcast %cst_4 : f32 to vector<16x1xf32>
    %15 = arith.addf %11, %14 : vector<16x1xf32>
    %16 = math.rsqrt %15 : vector<16x1xf32>
    %17 = vector.broadcast %16 : vector<16x1xf32> to vector<16x16xf32>
    %18 = arith.mulf %13, %17 : vector<16x16xf32>
    %c0_5 = arith.constant 0 : index
    %c0_6 = arith.constant 0 : index
    %19 = vector.load %arg1[%c0_5, %c0_6] : memref<16x16xf32, #tpu.memory_space<vmem>>, vector<16x16xf32>
    %cst_7 = arith.constant dense<0.000000e+00> : vector<16xf32>
    %20 = vector.multi_reduction <add>, %19, %cst_7 [1] : vector<16x16xf32> to vector<16xf32>
    %21 = vector.shape_cast %20 : vector<16xf32> to vector<16x1xf32>
    %cst_8 = arith.constant 1.600000e+01 : f32
    %22 = vector.broadcast %cst_8 : f32 to vector<16x1xf32>
    %23 = arith.divf %21, %22 : vector<16x1xf32>
    %24 = vector.broadcast %23 : vector<16x1xf32> to vector<16x16xf32>
    %25 = arith.subf %19, %24 : vector<16x16xf32>
    %26 = arith.mulf %25, %25 : vector<16x16xf32>
    %cst_9 = arith.constant dense<0.000000e+00> : vector<16xf32>
    %27 = vector.multi_reduction <add>, %26, %cst_9 [1] : vector<16x16xf32> to vector<16xf32>
    %28 = vector.shape_cast %27 : vector<16xf32> to vector<16x1xf32>
    %cst_10 = arith.constant 1.600000e+01 : f32
    %29 = vector.broadcast %cst_10 : f32 to vector<16x1xf32>
    %30 = arith.divf %28, %29 : vector<16x1xf32>
    %31 = vector.broadcast %23 : vector<16x1xf32> to vector<16x16xf32>
    %32 = arith.subf %19, %31 : vector<16x16xf32>
    %cst_11 = arith.constant 9.99999974E-6 : f32
    %33 = vector.broadcast %cst_11 : f32 to vector<16x1xf32>
    %34 = arith.addf %30, %33 : vector<16x1xf32>
    %35 = math.rsqrt %34 : vector<16x1xf32>
    %36 = vector.broadcast %35 : vector<16x1xf32> to vector<16x16xf32>
    %37 = arith.mulf %32, %36 : vector<16x16xf32>
    %c0_12 = arith.constant 0 : index
    %c0_13 = arith.constant 0 : index
    %38 = vector.load %arg3[%c0_12, %c0_13] : memref<16x64xf32, #tpu.memory_space<vmem>>, vector<16x64xf32>
    %cst_14 = arith.constant dense<0.000000e+00> : vector<16x64xf32>
    %39 = tpu.matmul %18, %38, %cst_14 {dimension_numbers = #tpu.dot_dimension_numbers<[1], [0], [0], [1], [0, 0, 1, 1], [], []>} : vector<16x16xf32>, vector<16x64xf32>, vector<16x64xf32> -> vector<16x64xf32>
    %c0_15 = arith.constant 0 : index
    %c0_16 = arith.constant 0 : index
    %40 = vector.load %arg4[%c0_15, %c0_16] : memref<1x64xf32, #tpu.memory_space<vmem>>, vector<1x64xf32>
    %41 = vector.broadcast %40 : vector<1x64xf32> to vector<16x64xf32>
    %42 = arith.addf %39, %41 : vector<16x64xf32>
    %c0_17 = arith.constant 0 : index
    %c0_18 = arith.constant 0 : index
    %43 = vector.load %arg5[%c0_17, %c0_18] : memref<16x32xf32, #tpu.memory_space<vmem>>, vector<16x32xf32>
    %cst_19 = arith.constant dense<0.000000e+00> : vector<16x32xf32>
    %44 = tpu.matmul %37, %43, %cst_19 {dimension_numbers = #tpu.dot_dimension_numbers<[1], [0], [0], [1], [0, 0, 1, 1], [], []>} : vector<16x16xf32>, vector<16x32xf32>, vector<16x32xf32> -> vector<16x32xf32>
    %c0_20 = arith.constant 0 : index
    %c0_21 = arith.constant 0 : index
    %45 = vector.load %arg6[%c0_20, %c0_21] : memref<1x32xf32, #tpu.memory_space<vmem>>, vector<1x32xf32>
    %46 = vector.broadcast %45 : vector<1x32xf32> to vector<16x32xf32>
    %47 = arith.addf %44, %46 : vector<16x32xf32>
    %c0_22 = arith.constant 0 : index
    %c0_23 = arith.constant 0 : index
    %48 = vector.load %arg7[%c0_22, %c0_23] : memref<32x32xf32, #tpu.memory_space<vmem>>, vector<32x32xf32>
    %c0_24 = arith.constant 0 : index
    %c0_25 = arith.constant 0 : index
    %49 = vector.load %arg8[%c0_24, %c0_25] : memref<1x32xf32, #tpu.memory_space<vmem>>, vector<1x32xf32>
    %50 = tpu.iota {dimensions = array<i32: 0>} : vector<8x8xi32>
    %51 = tpu.iota {dimensions = array<i32: 1>} : vector<8x8xi32>
    %52 = arith.cmpi eq, %50, %51 : vector<8x8xi32>
    %53 = vector.extract_strided_slice %42 {offsets = [0, 0], sizes = [8, 32], strides = [1, 1]} : vector<16x64xf32> to vector<8x32xf32>
    %54 = vector.extract_strided_slice %42 {offsets = [0, 32], sizes = [8, 32], strides = [1, 1]} : vector<16x64xf32> to vector<8x32xf32>
    %55 = vector.extract_strided_slice %47 {offsets = [0, 0], sizes = [8, 32], strides = [1, 1]} : vector<16x32xf32> to vector<8x32xf32>
    %cst_26 = arith.constant 0.000000e+00 : f32
    %56 = vector.broadcast %cst_26 : f32 to vector<8x32xf32>
    %57 = vector.extract_strided_slice %53 {offsets = [0, 0], sizes = [8, 16], strides = [1, 1]} : vector<8x32xf32> to vector<8x16xf32>
    %58 = vector.extract_strided_slice %54 {offsets = [0, 0], sizes = [8, 16], strides = [1, 1]} : vector<8x32xf32> to vector<8x16xf32>
    %59 = vector.extract_strided_slice %55 {offsets = [0, 0], sizes = [8, 16], strides = [1, 1]} : vector<8x32xf32> to vector<8x16xf32>
    %cst_27 = arith.constant dense<0.000000e+00> : vector<8x8xf32>
    %60 = tpu.matmul %57, %58, %cst_27 {dimension_numbers = #tpu.dot_dimension_numbers<[1], [1], [0], [0], [0, 0, 1, 0], [], []>} : vector<8x16xf32>, vector<8x16xf32>, vector<8x8xf32> -> vector<8x8xf32>
    %cst_28 = arith.constant -1.000000e+32 : f32
    %61 = vector.broadcast %cst_28 : f32 to vector<8x8xf32>
    %62 = arith.select %52, %61, %60 : vector<8x8xi1>, vector<8x8xf32>
    %cst_29 = arith.constant dense<0xFF800000> : vector<8xf32>
    %63 = vector.multi_reduction <maximumf>, %62, %cst_29 [1] : vector<8x8xf32> to vector<8xf32>
    %64 = vector.shape_cast %63 : vector<8xf32> to vector<8x1xf32>
    %65 = vector.broadcast %64 : vector<8x1xf32> to vector<8x8xf32>
    %66 = arith.subf %62, %65 : vector<8x8xf32>
    %67 = math.exp %66 : vector<8x8xf32>
    %cst_30 = arith.constant dense<0.000000e+00> : vector<8xf32>
    %68 = vector.multi_reduction <add>, %67, %cst_30 [1] : vector<8x8xf32> to vector<8xf32>
    %69 = vector.shape_cast %68 : vector<8xf32> to vector<8x1xf32>
    %70 = vector.broadcast %69 : vector<8x1xf32> to vector<8x8xf32>
    %71 = arith.divf %67, %70 : vector<8x8xf32>
    %cst_31 = arith.constant dense<0.000000e+00> : vector<8x16xf32>
    %72 = tpu.matmul %71, %59, %cst_31 {dimension_numbers = #tpu.dot_dimension_numbers<[1], [0], [0], [1], [0, 0, 1, 1], [], []>} : vector<8x8xf32>, vector<8x16xf32>, vector<8x16xf32> -> vector<8x16xf32>
    %73 = vector.extract_strided_slice %48 {offsets = [0, 0], sizes = [16, 32], strides = [1, 1]} : vector<32x32xf32> to vector<16x32xf32>
    %cst_32 = arith.constant dense<0.000000e+00> : vector<8x32xf32>
    %74 = tpu.matmul %72, %73, %cst_32 {dimension_numbers = #tpu.dot_dimension_numbers<[1], [0], [0], [1], [0, 0, 1, 1], [], []>} : vector<8x16xf32>, vector<16x32xf32>, vector<8x32xf32> -> vector<8x32xf32>
    %75 = arith.addf %56, %74 : vector<8x32xf32>
    %76 = vector.extract_strided_slice %53 {offsets = [0, 16], sizes = [8, 16], strides = [1, 1]} : vector<8x32xf32> to vector<8x16xf32>
    %77 = vector.extract_strided_slice %54 {offsets = [0, 16], sizes = [8, 16], strides = [1, 1]} : vector<8x32xf32> to vector<8x16xf32>
    %78 = vector.extract_strided_slice %55 {offsets = [0, 16], sizes = [8, 16], strides = [1, 1]} : vector<8x32xf32> to vector<8x16xf32>
    %cst_33 = arith.constant dense<0.000000e+00> : vector<8x8xf32>
    %79 = tpu.matmul %76, %77, %cst_33 {dimension_numbers = #tpu.dot_dimension_numbers<[1], [1], [0], [0], [0, 0, 1, 0], [], []>} : vector<8x16xf32>, vector<8x16xf32>, vector<8x8xf32> -> vector<8x8xf32>
    %cst_34 = arith.constant -1.000000e+32 : f32
    %80 = vector.broadcast %cst_34 : f32 to vector<8x8xf32>
    %81 = arith.select %52, %80, %79 : vector<8x8xi1>, vector<8x8xf32>
    %cst_35 = arith.constant dense<0xFF800000> : vector<8xf32>
    %82 = vector.multi_reduction <maximumf>, %81, %cst_35 [1] : vector<8x8xf32> to vector<8xf32>
    %83 = vector.shape_cast %82 : vector<8xf32> to vector<8x1xf32>
    %84 = vector.broadcast %83 : vector<8x1xf32> to vector<8x8xf32>
    %85 = arith.subf %81, %84 : vector<8x8xf32>
    %86 = math.exp %85 : vector<8x8xf32>
    %cst_36 = arith.constant dense<0.000000e+00> : vector<8xf32>
    %87 = vector.multi_reduction <add>, %86, %cst_36 [1] : vector<8x8xf32> to vector<8xf32>
    %88 = vector.shape_cast %87 : vector<8xf32> to vector<8x1xf32>
    %89 = vector.broadcast %88 : vector<8x1xf32> to vector<8x8xf32>
    %90 = arith.divf %86, %89 : vector<8x8xf32>
    %cst_37 = arith.constant dense<0.000000e+00> : vector<8x16xf32>
    %91 = tpu.matmul %90, %78, %cst_37 {dimension_numbers = #tpu.dot_dimension_numbers<[1], [0], [0], [1], [0, 0, 1, 1], [], []>} : vector<8x8xf32>, vector<8x16xf32>, vector<8x16xf32> -> vector<8x16xf32>
    %92 = vector.extract_strided_slice %48 {offsets = [16, 0], sizes = [16, 32], strides = [1, 1]} : vector<32x32xf32> to vector<16x32xf32>
    %cst_38 = arith.constant dense<0.000000e+00> : vector<8x32xf32>
    %93 = tpu.matmul %91, %92, %cst_38 {dimension_numbers = #tpu.dot_dimension_numbers<[1], [0], [0], [1], [0, 0, 1, 1], [], []>} : vector<8x16xf32>, vector<16x32xf32>, vector<8x32xf32> -> vector<8x32xf32>
    %94 = arith.addf %75, %93 : vector<8x32xf32>
    %95 = vector.broadcast %49 : vector<1x32xf32> to vector<8x32xf32>
    %96 = arith.addf %94, %95 : vector<8x32xf32>
    %97 = vector.extract_strided_slice %42 {offsets = [8, 0], sizes = [8, 32], strides = [1, 1]} : vector<16x64xf32> to vector<8x32xf32>
    %98 = vector.extract_strided_slice %42 {offsets = [8, 32], sizes = [8, 32], strides = [1, 1]} : vector<16x64xf32> to vector<8x32xf32>
    %99 = vector.extract_strided_slice %47 {offsets = [8, 0], sizes = [8, 32], strides = [1, 1]} : vector<16x32xf32> to vector<8x32xf32>
    %cst_39 = arith.constant 0.000000e+00 : f32
    %100 = vector.broadcast %cst_39 : f32 to vector<8x32xf32>
    %101 = vector.extract_strided_slice %97 {offsets = [0, 0], sizes = [8, 16], strides = [1, 1]} : vector<8x32xf32> to vector<8x16xf32>
    %102 = vector.extract_strided_slice %98 {offsets = [0, 0], sizes = [8, 16], strides = [1, 1]} : vector<8x32xf32> to vector<8x16xf32>
    %103 = vector.extract_strided_slice %99 {offsets = [0, 0], sizes = [8, 16], strides = [1, 1]} : vector<8x32xf32> to vector<8x16xf32>
    %cst_40 = arith.constant dense<0.000000e+00> : vector<8x8xf32>
    %104 = tpu.matmul %101, %102, %cst_40 {dimension_numbers = #tpu.dot_dimension_numbers<[1], [1], [0], [0], [0, 0, 1, 0], [], []>} : vector<8x16xf32>, vector<8x16xf32>, vector<8x8xf32> -> vector<8x8xf32>
    %cst_41 = arith.constant -1.000000e+32 : f32
    %105 = vector.broadcast %cst_41 : f32 to vector<8x8xf32>
    %106 = arith.select %52, %105, %104 : vector<8x8xi1>, vector<8x8xf32>
    %cst_42 = arith.constant dense<0xFF800000> : vector<8xf32>
    %107 = vector.multi_reduction <maximumf>, %106, %cst_42 [1] : vector<8x8xf32> to vector<8xf32>
    %108 = vector.shape_cast %107 : vector<8xf32> to vector<8x1xf32>
    %109 = vector.broadcast %108 : vector<8x1xf32> to vector<8x8xf32>
    %110 = arith.subf %106, %109 : vector<8x8xf32>
    %111 = math.exp %110 : vector<8x8xf32>
    %cst_43 = arith.constant dense<0.000000e+00> : vector<8xf32>
    %112 = vector.multi_reduction <add>, %111, %cst_43 [1] : vector<8x8xf32> to vector<8xf32>
    %113 = vector.shape_cast %112 : vector<8xf32> to vector<8x1xf32>
    %114 = vector.broadcast %113 : vector<8x1xf32> to vector<8x8xf32>
    %115 = arith.divf %111, %114 : vector<8x8xf32>
    %cst_44 = arith.constant dense<0.000000e+00> : vector<8x16xf32>
    %116 = tpu.matmul %115, %103, %cst_44 {dimension_numbers = #tpu.dot_dimension_numbers<[1], [0], [0], [1], [0, 0, 1, 1], [], []>} : vector<8x8xf32>, vector<8x16xf32>, vector<8x16xf32> -> vector<8x16xf32>
    %117 = vector.extract_strided_slice %48 {offsets = [0, 0], sizes = [16, 32], strides = [1, 1]} : vector<32x32xf32> to vector<16x32xf32>
    %cst_45 = arith.constant dense<0.000000e+00> : vector<8x32xf32>
    %118 = tpu.matmul %116, %117, %cst_45 {dimension_numbers = #tpu.dot_dimension_numbers<[1], [0], [0], [1], [0, 0, 1, 1], [], []>} : vector<8x16xf32>, vector<16x32xf32>, vector<8x32xf32> -> vector<8x32xf32>
    %119 = arith.addf %100, %118 : vector<8x32xf32>
    %120 = vector.extract_strided_slice %97 {offsets = [0, 16], sizes = [8, 16], strides = [1, 1]} : vector<8x32xf32> to vector<8x16xf32>
    %121 = vector.extract_strided_slice %98 {offsets = [0, 16], sizes = [8, 16], strides = [1, 1]} : vector<8x32xf32> to vector<8x16xf32>
    %122 = vector.extract_strided_slice %99 {offsets = [0, 16], sizes = [8, 16], strides = [1, 1]} : vector<8x32xf32> to vector<8x16xf32>
    %cst_46 = arith.constant dense<0.000000e+00> : vector<8x8xf32>
    %123 = tpu.matmul %120, %121, %cst_46 {dimension_numbers = #tpu.dot_dimension_numbers<[1], [1], [0], [0], [0, 0, 1, 0], [], []>} : vector<8x16xf32>, vector<8x16xf32>, vector<8x8xf32> -> vector<8x8xf32>
    %cst_47 = arith.constant -1.000000e+32 : f32
    %124 = vector.broadcast %cst_47 : f32 to vector<8x8xf32>
    %125 = arith.select %52, %124, %123 : vector<8x8xi1>, vector<8x8xf32>
    %cst_48 = arith.constant dense<0xFF800000> : vector<8xf32>
    %126 = vector.multi_reduction <maximumf>, %125, %cst_48 [1] : vector<8x8xf32> to vector<8xf32>
    %127 = vector.shape_cast %126 : vector<8xf32> to vector<8x1xf32>
    %128 = vector.broadcast %127 : vector<8x1xf32> to vector<8x8xf32>
    %129 = arith.subf %125, %128 : vector<8x8xf32>
    %130 = math.exp %129 : vector<8x8xf32>
    %cst_49 = arith.constant dense<0.000000e+00> : vector<8xf32>
    %131 = vector.multi_reduction <add>, %130, %cst_49 [1] : vector<8x8xf32> to vector<8xf32>
    %132 = vector.shape_cast %131 : vector<8xf32> to vector<8x1xf32>
    %133 = vector.broadcast %132 : vector<8x1xf32> to vector<8x8xf32>
    %134 = arith.divf %130, %133 : vector<8x8xf32>
    %cst_50 = arith.constant dense<0.000000e+00> : vector<8x16xf32>
    %135 = tpu.matmul %134, %122, %cst_50 {dimension_numbers = #tpu.dot_dimension_numbers<[1], [0], [0], [1], [0, 0, 1, 1], [], []>} : vector<8x8xf32>, vector<8x16xf32>, vector<8x16xf32> -> vector<8x16xf32>
    %136 = vector.extract_strided_slice %48 {offsets = [16, 0], sizes = [16, 32], strides = [1, 1]} : vector<32x32xf32> to vector<16x32xf32>
    %cst_51 = arith.constant dense<0.000000e+00> : vector<8x32xf32>
    %137 = tpu.matmul %135, %136, %cst_51 {dimension_numbers = #tpu.dot_dimension_numbers<[1], [0], [0], [1], [0, 0, 1, 1], [], []>} : vector<8x16xf32>, vector<16x32xf32>, vector<8x32xf32> -> vector<8x32xf32>
    %138 = arith.addf %119, %137 : vector<8x32xf32>
    %139 = vector.broadcast %49 : vector<1x32xf32> to vector<8x32xf32>
    %140 = arith.addf %138, %139 : vector<8x32xf32>
    %141 = tpu.concatenate %96, %140 in 0 : vector<8x32xf32>, vector<8x32xf32> -> vector<16x32xf32>
    %142 = tpu.concatenate %71, %115, %90, %134 in 0 : vector<8x8xf32>, vector<8x8xf32>, vector<8x8xf32>, vector<8x8xf32> -> vector<32x8xf32>
    %c0_52 = arith.constant 0 : index
    %c0_53 = arith.constant 0 : index
    %143 = vector.load %arg16[%c0_52, %c0_53] : memref<32x8xf32, #tpu.memory_space<vmem>>, vector<32x8xf32>
    tpu.vector_store %arg16[%c0_52, %c0_53], %142 {strides = array<i32>} : memref<32x8xf32, #tpu.memory_space<vmem>>, vector<32x8xf32>,
    %c0_54 = arith.constant 0 : index
    %c0_55 = arith.constant 0 : index
    %144 = vector.load %arg2[%c0_54, %c0_55] : memref<16x1xf32, #tpu.memory_space<vmem>>, vector<16x1xf32>
    %145 = vector.broadcast %144 : vector<16x1xf32> to vector<16x32xf32>
    %146 = arith.mulf %141, %145 : vector<16x32xf32>
    %c0_56 = arith.constant 0 : index
    %c0_57 = arith.constant 0 : index
    %147 = vector.load %arg9[%c0_56, %c0_57] : memref<32x32xf32, #tpu.memory_space<vmem>>, vector<32x32xf32>
    %cst_58 = arith.constant dense<0.000000e+00> : vector<16x32xf32>
    %148 = tpu.matmul %146, %147, %cst_58 {dimension_numbers = #tpu.dot_dimension_numbers<[1], [0], [0], [1], [0, 0, 1, 1], [], []>} : vector<16x32xf32>, vector<32x32xf32>, vector<16x32xf32> -> vector<16x32xf32>
    %c0_59 = arith.constant 0 : index
    %c0_60 = arith.constant 0 : index
    %149 = vector.load %arg10[%c0_59, %c0_60] : memref<1x32xf32, #tpu.memory_space<vmem>>, vector<1x32xf32>
    %150 = vector.broadcast %149 : vector<1x32xf32> to vector<16x32xf32>
    %151 = arith.addf %148, %150 : vector<16x32xf32>
    %152 = math.tanh %151 : vector<16x32xf32>
    %c0_61 = arith.constant 0 : index
    %c0_62 = arith.constant 0 : index
    %153 = vector.load %arg11[%c0_61, %c0_62] : memref<32x32xf32, #tpu.memory_space<vmem>>, vector<32x32xf32>
    %cst_63 = arith.constant dense<0.000000e+00> : vector<16x32xf32>
    %154 = tpu.matmul %152, %153, %cst_63 {dimension_numbers = #tpu.dot_dimension_numbers<[1], [0], [0], [1], [0, 0, 1, 1], [], []>} : vector<16x32xf32>, vector<32x32xf32>, vector<16x32xf32> -> vector<16x32xf32>
    %c0_64 = arith.constant 0 : index
    %c0_65 = arith.constant 0 : index
    %155 = vector.load %arg12[%c0_64, %c0_65] : memref<1x32xf32, #tpu.memory_space<vmem>>, vector<1x32xf32>
    %156 = vector.broadcast %155 : vector<1x32xf32> to vector<16x32xf32>
    %157 = arith.addf %154, %156 : vector<16x32xf32>
    %158 = arith.addf %157, %146 : vector<16x32xf32>
    %cst_66 = arith.constant dense<0.000000e+00> : vector<16xf32>
    %159 = vector.multi_reduction <add>, %158, %cst_66 [1] : vector<16x32xf32> to vector<16xf32>
    %160 = vector.shape_cast %159 : vector<16xf32> to vector<16x1xf32>
    %cst_67 = arith.constant 3.200000e+01 : f32
    %161 = vector.broadcast %cst_67 : f32 to vector<16x1xf32>
    %162 = arith.divf %160, %161 : vector<16x1xf32>
    %163 = vector.broadcast %162 : vector<16x1xf32> to vector<16x32xf32>
    %164 = arith.subf %158, %163 : vector<16x32xf32>
    %165 = arith.mulf %164, %164 : vector<16x32xf32>
    %cst_68 = arith.constant dense<0.000000e+00> : vector<16xf32>
    %166 = vector.multi_reduction <add>, %165, %cst_68 [1] : vector<16x32xf32> to vector<16xf32>
    %167 = vector.shape_cast %166 : vector<16xf32> to vector<16x1xf32>
    %cst_69 = arith.constant 3.200000e+01 : f32
    %168 = vector.broadcast %cst_69 : f32 to vector<16x1xf32>
    %169 = arith.divf %167, %168 : vector<16x1xf32>
    %170 = vector.broadcast %162 : vector<16x1xf32> to vector<16x32xf32>
    %171 = arith.subf %158, %170 : vector<16x32xf32>
    %cst_70 = arith.constant 9.99999974E-6 : f32
    %172 = vector.broadcast %cst_70 : f32 to vector<16x1xf32>
    %173 = arith.addf %169, %172 : vector<16x1xf32>
    %174 = math.rsqrt %173 : vector<16x1xf32>
    %175 = vector.broadcast %174 : vector<16x1xf32> to vector<16x32xf32>
    %176 = arith.mulf %171, %175 : vector<16x32xf32>
    %c0_71 = arith.constant 0 : index
    %c0_72 = arith.constant 0 : index
    %177 = vector.load %arg13[%c0_71, %c0_72] : memref<1x32xf32, #tpu.memory_space<vmem>>, vector<1x32xf32>
    %178 = vector.broadcast %177 : vector<1x32xf32> to vector<16x32xf32>
    %179 = arith.mulf %176, %178 : vector<16x32xf32>
    %c0_73 = arith.constant 0 : index
    %c0_74 = arith.constant 0 : index
    %180 = vector.load %arg14[%c0_73, %c0_74] : memref<1x32xf32, #tpu.memory_space<vmem>>, vector<1x32xf32>
    %181 = vector.broadcast %180 : vector<1x32xf32> to vector<16x32xf32>
    %182 = arith.addf %179, %181 : vector<16x32xf32>
    %183 = vector.broadcast %144 : vector<16x1xf32> to vector<16x32xf32>
    %184 = arith.mulf %182, %183 : vector<16x32xf32>
    %c0_75 = arith.constant 0 : index
    %c0_76 = arith.constant 0 : index
    %185 = vector.load %arg15[%c0_75, %c0_76] : memref<16x32xf32, #tpu.memory_space<vmem>>, vector<16x32xf32>
    tpu.vector_store %arg15[%c0_75, %c0_76], %184 {strides = array<i32>} : memref<16x32xf32, #tpu.memory_space<vmem>>, vector<16x32xf32>,
    return
  }
}

</mosaic_0001>

<bundles_post_ra>
// kernel: encoder_layer.1
= control target key start
LH: loop header
LB: loop body
LE: loop exit
PB: predicated region body
PF: predicated region fallthrough
CT: control target
= control target key end

     0   :  { %s2208_s0 = inlined_call_operand.vmem [shape: f32[16,16], index: 0, kind: input, shape index: {}]   ;;  %s2209_s1 = inlined_call_operand.vmem [shape: f32[16,16], index: 1, kind: input, shape index: {}]   ;;  %s2210_s2 = inlined_call_operand.vmem [shape: f32[16,1], index: 2, kind: input, shape index: {}]   ;;  %s2211_s3 = inlined_call_operand.vmem [shape: f32[16,64], index: 3, kind: input, shape index: {}]   ;;  %s2212_s4 = inlined_call_operand.vmem [shape: f32[1,64], index: 4, kind: input, shape index: {}]   ;;  %s2213_s5 = inlined_call_operand.vmem [shape: f32[16,32], index: 5, kind: input, shape index: {}]   ;;  %s2214_s6 = inlined_call_operand.vmem [shape: f32[1,32], index: 6, kind: input, shape index: {}]   ;;  %s2215_s7 = inlined_call_operand.vmem [shape: f32[32,32], index: 7, kind: input, shape index: {}]   ;;  %s2216_s8 = inlined_call_operand.vmem [shape: f32[1,32], index: 8, kind: input, shape index: {}]   ;;  %s2217_s9 = inlined_call_operand.vmem [shape: f32[32,32], index: 9, kind: input, shape index: {}]   ;;  %s2218_s10 = inlined_call_operand.vmem [shape: f32[1,32], index: 10, kind: input, shape index: {}]   ;;  %s2219_s11 = inlined_call_operand.vmem [shape: f32[32,32], index: 11, kind: input, shape index: {}]   ;;  %s2220_s12 = inlined_call_operand.vmem [shape: f32[1,32], index: 12, kind: input, shape index: {}]   ;;  %s2221_s13 = inlined_call_operand.vmem [shape: f32[1,32], index: 13, kind: input, shape index: {}]   ;;  %s2222_s14 = inlined_call_operand.vmem [shape: f32[1,32], index: 14, kind: input, shape index: {}]   ;;  %s2223_s15 = inlined_call_operand.hbm [shape: f32[16,32], index: 15, kind: output, shape index: {0}]   ;;  %s2224_s16 = inlined_call_operand.hbm [shape: f32[32,8], index: 16, kind: output, shape index: {1}]  }
   0x1   :  { %2226 = sst [smem:[#allocation8_spill]] %s2208_s0 }
   0x2   :  { %22 = vsyncpa [#allocation3], 0  ;;  %s2227_s23 = sld [smem:[#allocation8_spill]]  ;;  %vm56_vm0 = vcmask 130048  }
   0x8   :  { %v54_v0 = vld [vmem:[%s2227_s23] sm:$0xff]  ;;  %v55_v1 = vld [vmem:[%s2227_s23 + $0x8] sm:$0xff] }
   0x9   :  { %23 = vsyncpa [#allocation5], 0  ;;  %v57_v2 = vsel %vm56_vm0, %v54_v0, 0.0  ;;  %v60_v3 = vsel %vm56_vm0, %v55_v1, 0.0  ;;  %v112_v14 = vld [vmem:[%s2211_s3] sm:$0xff]  ;;  %v113_v15 = vld [vmem:[%s2211_s3 + $0x8] sm:$0xff]  ;;  %v297_v53 = vlaneseq }
   0xa   :  { %58 = vadd.xlane.f32.xlu0 %v57_v2  ;;  %v1732_v16 = vpack.c.bf16 %v113_v15, %v112_v14  ;;  %v1861_v27 = vmov 0.0   ;;  %vm1862_vm1 = vmmov 0   ;;  %v1549_v28 = vld [vmem:[%s2212_s4] ss:$0 sm:$0xff]  ;;  %s1863_s0 = smov 80   ;;  %s1864_s17 = smov 96  }
   0xb   :  { %s1865_s18 = smov 112   ;;  %v85_v33 = vld [vmem:[%s2209_s1 + $0x8] sm:$0xff]  ;;  %v84_v35 = vld [vmem:[%s2209_s1] sm:$0xff]  ;;  %v2012_v54 = vshrl.u32 %v297_v53, 7  ;;  %v2014_v55 = vand.u32 127, %v297_v53  ;;  %vm380_vm3 = vcmask 64512  }
   0xc   :  { %1733 = vmatprep.subr.bf16.mxu0 %v1732_v16  ;;  %v89_v34 = vsel %vm56_vm0, %v85_v33, 0.0  ;;  %v86_v36 = vsel %vm56_vm0, %v84_v35, 0.0  ;;  %v202_v50 = vld [vmem:[%s2213_s5] sm:$0xff]  ;;  %v203_v51 = vld [vmem:[%s2213_s5 + $0x8] sm:$0xff]  ;;  %vm1290_vm4 = vcmask 261120  }
   0xd   :  { %1735 = vmatpush3.bf16.msra.mxu0 %v1732_v16  ;;  %v1736_v52 = vpack.c.bf16 %v203_v51, %v202_v50  ;;  %vm301_vm2 = vcmp.eq.s32.totalorder %v2012_v54, %v2014_v55 }
   0xe   :  { %61 = vadd.xlane.f32.xlu0 %v60_v3  ;;  %1642 = vmatprep.subr.mxu0 %v1861_v27 }
   0xf   :  { %1737 = vmatprep.subr.bf16.mxu1 %v1736_v52 }
  0x10   :  { %1739 = vmatpush3.bf16.msra.mxu1 %v1736_v52 }
  0x11   :  { %1647 = vmatprep.subr.mxu1 %v1861_v27 }
  0x97   :  { %v59_v4 = vpop.xlane.xlu0 %58 }
  0x98   :  { %v64_v5 = vmul.f32 0.0625, %v59_v4 }
  0x9a   :  { %v66_v6 = vsub.f32 %v54_v0, %v64_v5 }
  0x9b   :  { %v62_v7 = vpop.xlane.xlu0 %61 }
  0x9c   :  { %v65_v8 = vmul.f32 0.0625, %v62_v7  ;;  %v68_v9 = vmul.f32 %v66_v6, %v66_v6 }
  0x9e   :  { %v67_v10 = vsub.f32 %v55_v1, %v65_v8  ;;  %v70_v11 = vsel %vm56_vm0, %v68_v9, 0.0 }
  0x9f   :  { %71 = vadd.xlane.f32.xlu1 %v70_v11 }
  0xa0   :  { %v69_v12 = vmul.f32 %v67_v10, %v67_v10 }
  0xa2   :  { %v73_v13 = vsel %vm56_vm0, %v69_v12, 0.0 }
  0xa3   :  { %74 = vadd.xlane.f32.xlu1 %v73_v13 }
 0x12c   :  { %v72_v17 = vpop.xlane.xlu1 %71 }
 0x12d   :  { %v76_v18 = vmul.f32 0.0625, %v72_v17 }
 0x12f   :  { %v78_v19 = vadd.f32 1e-05, %v76_v18 }
 0x130   :  { %v75_v20 = vpop.xlane.xlu1 %74 }
 0x131   :  { %1781 = vrsqrt.f32 %v78_v19  ;;  %v77_v21 = vmul.f32 0.0625, %v75_v20  ;;  %v1552_v20 = vld [vmem:[%s2214_s6] ss:$0 sm:$0xff] }
 0x133   :  { %v79_v22 = vadd.f32 1e-05, %v77_v21  ;;  %v1866_v21 = vmov 0.0|0.0  }
 0x135   :  { %1783 = vrsqrt.f32 %v79_v22 }
 0x13b   :  { %v1782_v23 = vpop.eup %1781 }
 0x13c   :  { %v82_v24 = vmul.f32 %v1782_v23, %v66_v6 }
 0x13e   :  { %1632 = vmatprep.mubr.msk.f32.mxu0 %vm56_vm0, %v82_v24 }
 0x13f   :  { %v1784_v25 = vpop.eup %1783 }
 0x140   :  { %v83_v26 = vmul.f32 %v1784_v25, %v67_v10 }
 0x142   :  { %1633 = vmatmul.mubr.msk.f32.vlgmr.msra.gmra.mrb[0].mxu0 %vm56_vm0, %v83_v26 }
 0x143   :  { %1644 = vmatprep.mubr.msk.f32.mxu0 %vm1862_vm1, %v1861_v27 }
 0x215   :  { %v1634_v29 = vpop.f32.mrb[0].mxu0 }
 0x216   :  { %v1981_v30 = vadd.f32 %v1634_v29, %v1549_v28  ;;  %v193_v31 = vpop.f32.mrb[1].mxu0 }
 0x217   :  { %v194_v32 = vadd.f32 %v1549_v28, %v193_v31 }
 0x219   :  { %467 = vrot.lane.b32.xlu1 %v194_v32, %s1863_s0  ;;  %303 = vrot.lane.b32.xlu0 %v194_v32, %s1864_s17 }
 0x21d   :  { %465 = vrot.lane.b32.xlu1 %v194_v32, %s1865_s18 }
 0x238   :  { %90 = vadd.xlane.f32.xlu0 %v89_v34  ;;  %v292_v34 = vld [vmem:[%s2215_s7] sm:$0xff] }
 0x241   :  { %87 = vadd.xlane.f32.xlu1 %v86_v36 }
 0x28b   :  { %v304_v37 = vpop.permute.xlu0 %303  ;;  %v468_v38 = vpop.permute.xlu1 %467 }
 0x28c   :  { %1643 = vmatpush3.xpose.msk.msra.mxu0 %vm56_vm0, %v304_v37 }
 0x28d   :  { %1652 = vmatprep.subr.mxu0 %v1861_v27 }
 0x28f   :  { %1645 = vmatmul.mubr.msk.f32.vlgmr.msra.gmra.mrb[2].mxu0 %vm56_vm0, %v194_v32  ;;  %v466_v39 = vpop.permute.xlu1 %465 }
 0x290   :  { %1653 = vmatpush3.xpose.msk.msra.mxu0 %vm56_vm0, %v468_v38  ;;  %1654 = vmatprep.mubr.msk.f32.mxu0 %vm1862_vm1, %v1861_v27  ;;  %v294_v38 = vld [vmem:[%s2215_s7 + $0x10] sm:$0xff] }
 0x291   :  { %1740 = vmatprep.subr.bf16.mxu0 %v1866_v21 }
 0x293   :  { %1655 = vmatmul.mubr.msk.f32.vlgmr.msra.gmra.mrb[4].mxu0 %vm56_vm0, %v466_v39  ;;  %v295_v39 = vld [vmem:[%s2215_s7 + $0x18] sm:$0xff] }
 0x294   :  { %1666 = vmatprep.mubr.msk.f32.mxu0 %vm1862_vm1, %v1861_v27 }
 0x2c5   :  { %v91_v40 = vpop.xlane.xlu0 %90 }
 0x2c6   :  { %v93_v41 = vmul.f32 0.0625, %v91_v40  ;;  %v1741_v40 = vpack.c.bf16 %v295_v39, %v294_v38  ;;  %v1374_v39 = vld [vmem:[%s2219_s11] sm:$0xff] }
 0x2c8   :  { %v95_v44 = vsub.f32 %v85_v33, %v93_v41  ;;  %1742 = vmatpush3.bf16.msra.mxu0 %v1741_v40 }
 0x2c9   :  { %1676 = vmatprep.subr.mxu0 %v1861_v27 }
 0x2ca   :  { %v97_v47 = vmul.f32 %v95_v44, %v95_v44 }
 0x2cc   :  { %v101_v49 = vsel %vm56_vm0, %v97_v47, 0.0 }
 0x2ce   :  { %v88_v42 = vpop.xlane.xlu1 %87 }
 0x2cf   :  { %v92_v43 = vmul.f32 0.0625, %v88_v42 }
 0x2d1   :  { %v94_v45 = vsub.f32 %v84_v35, %v92_v43  ;;  %v293_v35 = vld [vmem:[%s2215_s7 + $0x8] sm:$0xff] }
 0x2d2   :  { %v2057_v36 = vpack.c.bf16 %v293_v35, %v292_v34 }
 0x2d3   :  { %v96_v46 = vmul.f32 %v94_v45, %v94_v45 }
 0x2d5   :  { %v98_v48 = vsel %vm56_vm0, %v96_v46, 0.0 }
 0x2d6   :  { %99 = vadd.xlane.f32.xlu0 %v98_v48 }
 0x2da   :  { %102 = vadd.xlane.f32.xlu0 %v101_v49 }
 0x362   :  { %v375_v56 = vpop.f32.mrb[2].mxu0 }
 0x363   :  { %v379_v57 = vsel %vm301_vm2, -1e+32, %v375_v56  ;;  %v1646_v58 = vpop.f32.mrb[3].mxu0  ;;  %v100_v59 = vpop.xlane.xlu0 %99 }
 0x364   :  { %v104_v60 = vmul.f32 0.0625, %v100_v59  ;;  %v381_v61 = vsel %vm380_vm3, %v379_v57, -inf }
 0x365   :  { %382 = vmax.xlane.f32.xlu1 %v381_v61 }
 0x366   :  { %v106_v62 = vadd.f32 1e-05, %v104_v60  ;;  %v539_v63 = vpop.f32.mrb[4].mxu0 }
 0x367   :  { %v543_v0 = vsel %vm301_vm2, -1e+32, %v539_v63  ;;  %v1656_v1 = vpop.f32.mrb[5].mxu0  ;;  %v103_v2 = vpop.xlane.xlu0 %102 }
 0x368   :  { %1785 = vrsqrt.f32 %v106_v62  ;;  %v105_v3 = vmul.f32 0.0625, %v103_v2  ;;  %v544_v4 = vsel %vm380_vm3, %v543_v0, -inf  ;;  %v1867_v62 = vmov 0  }
 0x369   :  { %545 = vmax.xlane.f32.xlu0 %v544_v4  ;;  %1780 = vset.pattern.permute.xlu1 %v1867_v62 }
 0x36a   :  { %v107_v5 = vadd.f32 1e-05, %v105_v3  ;;  %1779 = vset.pattern.permute.xlu0 %v1867_v62 }
 0x36c   :  { %1787 = vrsqrt.f32 %v107_v5 }
 0x372   :  { %v1786_v6 = vpop.eup %1785 }
 0x373   :  { %v110_v7 = vmul.f32 %v1786_v6, %v94_v45 }
 0x375   :  { %1639 = vmatprep.mubr.msk.f32.mxu1 %vm56_vm0, %v110_v7  ;;  %v1265_v7 = vld [vmem:[%s2210_s2] sm:$0xff] }
 0x376   :  { %v1788_v8 = vpop.eup %1787 }
 0x377   :  { %v111_v9 = vmul.f32 %v1788_v8, %v95_v44 }
 0x379   :  { %1640 = vmatmul.mubr.msk.f32.vlgmr.msra.gmra.mrb[0].mxu1 %vm56_vm0, %v111_v9 }
 0x37a   :  { %1649 = vmatprep.mubr.msk.f32.mxu1 %vm1862_vm1, %v1861_v27 }
 0x3f2   :  { %v383_v10 = vpop.xlane.xlu1 %382 }
 0x3f3   :  { %v384_v11 = vsub.f32 %v379_v57, %v383_v10 }
 0x3f5   :  { %v385_v12 = vmul.f32 1.442695, %v384_v11 }
 0x3f6   :  { %v546_v13 = vpop.xlane.xlu0 %545 }
 0x3f7   :  { %1789 = vpow2.f32 %v385_v12  ;;  %v547_v14 = vsub.f32 %v543_v0, %v546_v13 }
 0x3f9   :  { %v548_v15 = vmul.f32 1.442695, %v547_v14 }
 0x3fb   :  { %1791 = vpow2.f32 %v548_v15  ;;  %v1266_v15 = vld [vmem:[%s2210_s2 + $0x8] sm:$0xff] }
 0x401   :  { %v1790_v16 = vpop.eup %1789 }
 0x402   :  { %v387_v17 = vsel %vm380_vm3, %v1790_v16, 0.0 }
 0x403   :  { %388 = vadd.xlane.f32.xlu1 %v387_v17 }
 0x405   :  { %v1792_v18 = vpop.eup %1791 }
 0x406   :  { %v550_v19 = vsel %vm380_vm3, %v1792_v18, 0.0 }
 0x407   :  { %551 = vadd.xlane.f32.xlu0 %v550_v19 }
 0x41d   :  { %786 = vrot.lane.b32.xlu0 %v1981_v30, %s1864_s17 }
 0x44c   :  { %v1641_v22 = vpop.f32.mrb[0].mxu1 }
 0x44d   :  { %v2038_v23 = vadd.f32 %v1641_v22, %v1552_v20  ;;  %v283_v24 = vpop.f32.mrb[1].mxu1 }
 0x44e   :  { %v284_v25 = vadd.f32 %v1552_v20, %v283_v24  ;;  %v1280_v24 = vld [vmem:[%s2217_s9 + $0x8] sm:$0xff] }
 0x450   :  { %556 = vrot.lane.b32.xlu1 %v284_v25, %s1865_s18  ;;  %1648 = vmatpush3.msra.mxu1 %v284_v25 }
 0x451   :  { %1657 = vmatprep.subr.mxu1 %v1861_v27 }
 0x454   :  { %949 = vrot.lane.b32.xlu1 %v1981_v30, %s1863_s0 }
 0x458   :  { %947 = vrot.lane.b32.xlu1 %v1981_v30, %s1865_s18 }
 0x490   :  { %v389_v26 = vpop.xlane.xlu1 %388 }
 0x491   :  { %1793 = vrcp.f32 %v389_v26  ;;  %v1281_v26 = vld [vmem:[%s2217_s9 + $0x10] sm:$0xff] }
 0x494   :  { %v552_v28 = vpop.xlane.xlu0 %551 }
 0x495   :  { %1795 = vrcp.f32 %v552_v28  ;;  %v1282_v28 = vld [vmem:[%s2217_s9 + $0x18] sm:$0xff] }
 0x498   :  { %v787_v44 = vpop.permute.xlu0 %786 }
 0x49b   :  { %v1794_v29 = vpop.eup %1793 }
 0x49c   :  { %v391_v31 = vmul.f32 %v1794_v29, %v1790_v16  ;;  %v1563_v16 = vld [vmem:[%s2216_s8] ss:$0 sm:$0xff]  ;;  %v1756_v29 = vpack.c.bf16 %v1282_v28, %v1281_v26 }
 0x49e   :  { %1261 = vst.msk [vmem:[#allocation4] sm:$0xff] %vm380_vm3, %v391_v31  ;;  %1650 = vmatmul.mubr.msk.f32.vlgmr.msra.gmra.mrb[2].mxu1 %vm380_vm3, %v391_v31 }
 0x49f   :  { %v1796_v32 = vpop.eup %1795  ;;  %1659 = vmatprep.mubr.msk.f32.mxu1 %vm1862_vm1, %v1861_v27 }
 0x4a0   :  { %v554_v33 = vmul.f32 %v1796_v32, %v1792_v18 }
 0x4a2   :  { %1263 = vst.msk [vmem:[#allocation4 + $0x10] sm:$0xff] %vm380_vm3, %v554_v33 }
 0x4c2   :  { %v557_v37 = vpop.permute.xlu1 %556 }
 0x4c3   :  { %1658 = vmatpush3.msra.mxu1 %v557_v37 }
 0x4c4   :  { %1660 = vmatmul.mubr.msk.f32.vlgmr.msra.gmra.mrb[4].mxu1 %vm380_vm3, %v554_v33  ;;  %1743 = vmatprep.subr.bf16.mxu1 %v1866_v21 }
 0x4c5   :  { %1745 = vmatpush3.bf16.msra.mxu1 %v2057_v36  ;;  %1673 = vmatprep.mubr.msk.f32.mxu1 %vm1862_vm1, %v1861_v27 }
 0x4c6   :  { %1681 = vmatprep.subr.mxu1 %v1861_v27  ;;  %v950_v46 = vpop.permute.xlu1 %949 }
 0x4ca   :  { %v948_v47 = vpop.permute.xlu1 %947 }
 0x571   :  { %v461_v41 = vpop.f32.mrb[2].mxu1 }
 0x572   :  { %v1651_v42 = vpop.f32.mrb[3].mxu1  ;;  %1674 = vmatmul.mubr.msk.f32.vlgmr.msra.gmra.mrb[6].mxu1 %vm56_vm0, %v461_v41  ;;  %v1376_v41 = vld [vmem:[%s2219_s11 + $0x10] sm:$0xff] }
 0x573   :  { %1682 = vmatpush3.msra.mxu1 %v2038_v23  ;;  %1683 = vmatprep.mubr.msk.f32.mxu1 %vm1862_vm1, %v1861_v27 }
 0x574   :  { %1691 = vmatprep.subr.mxu1 %v1861_v27 }
 0x597   :  { %v628_v43 = vpop.f32.mrb[4].mxu1 }
 0x598   :  { %v1661_v45 = vpop.f32.mrb[5].mxu1  ;;  %1667 = vmatmul.mubr.msk.f32.vlgmr.msra.gmra.mrb[6].mxu0 %vm56_vm0, %v628_v43  ;;  %v1377_v43 = vld [vmem:[%s2219_s11 + $0x18] sm:$0xff] }
 0x599   :  { %1677 = vmatpush3.xpose.msk.msra.mxu0 %vm56_vm0, %v787_v44  ;;  %1678 = vmatprep.mubr.msk.f32.mxu0 %vm1862_vm1, %v1861_v27  ;;  %v1764_v44 = vpack.c.bf16 %v1377_v43, %v1376_v41  ;;  %v1572_v45 = vld [vmem:[%s2218_s10] ss:$0 sm:$0xff]  ;;  %s1868_s10 = smov [#allocation4]  }
 0x59a   :  { %1686 = vmatprep.subr.mxu0 %v1861_v27 }
 0x59c   :  { %1679 = vmatmul.mubr.msk.f32.vlgmr.msra.gmra.mrb[8].mxu0 %vm56_vm0, %v1981_v30 }
 0x59d   :  { %1687 = vmatpush3.xpose.msk.msra.mxu0 %vm56_vm0, %v950_v46  ;;  %1688 = vmatprep.mubr.msk.f32.mxu0 %vm1862_vm1, %v1861_v27 }
 0x59e   :  { %1746 = vmatprep.subr.bf16.mxu0 %v1866_v21 }
 0x5a0   :  { %1689 = vmatmul.mubr.msk.f32.vlgmr.msra.gmra.mrb[10].mxu0 %vm56_vm0, %v948_v47 }
 0x5a1   :  { %1748 = vmatpush3.bf16.msra.mxu0 %v1741_v40  ;;  %1700 = vmatprep.mubr.msk.f32.mxu0 %vm1862_vm1, %v1861_v27  ;;  %v1375_v40 = vld [vmem:[%s2219_s11 + $0x8] sm:$0xff] }
 0x5a2   :  { %v1760_v42 = vpack.c.bf16 %v1375_v40, %v1374_v39 }
 0x645   :  { %v774_v48 = vpop.f32.mrb[6].mxu1 }
 0x646   :  { %v1675_v49 = vpop.f32.mrb[7].mxu1 }
 0x66b   :  { %v701_v50 = vpop.f32.mrb[6].mxu0 }
 0x66c   :  { %v775_v51 = vadd.f32 %v774_v48, %v701_v50  ;;  %v1668_v52 = vpop.f32.mrb[7].mxu0 }
 0x66d   :  { %v1575_v52 = vld [vmem:[%s2220_s12] ss:$0 sm:$0xff]  ;;  %s1534_s12 = sshll.u32 %s1868_s10, 4  ;;  %s1535_s12 = int_to_ptr.vmem [resolvable:$true] %s1534_s12 }
 0x66e   :  { %v784_v20 = vadd.f32 %v1563_v16, %v775_v51  ;;  %s1813_s17 = scalar_lea.vmem %s1535_s12, 512  ;;  %p1818_p1 = scmp.lt.s32.totalorder %s1535_s12, %s1535_s12 }
 0x66f   :  { %v858_v30 = vpop.f32.mrb[8].mxu0  ;;  %p1814_p0 = scmp.ne.s32.totalorder %s1535_s12, %s1813_s17  ;;  %p1819_p2 = scmp.lt.s32.totalorder %s1813_s17, %s1813_s17 }
 0x670   :  { %v862_v53 = vsel %vm301_vm2, -1e+32, %v858_v30  ;;  %v1680_v56 = vpop.f32.mrb[9].mxu0 }
 0x671   :  { %v863_v57 = vsel %vm380_vm3, %v862_v53, -inf  ;;  %p1820_p3 = por %p1819_p2, %p1818_p1 }
 0x672   :  { %864 = vmax.xlane.f32.xlu1 %v863_v57 }
 0x673   :  { %v1021_v58 = vpop.f32.mrb[10].mxu0  ;;  %p1821_p4 = pnand %p1820_p3, %p1814_p0 }
 0x674   :  { %v1025_v59 = vsel %vm301_vm2, -1e+32, %v1021_v58  ;;  %v1690_v60 = vpop.f32.mrb[11].mxu0 }
 0x675   :  { %v1026_v61 = vsel %vm380_vm3, %v1025_v59, -inf }
 0x676   :  { %1027 = vmax.xlane.f32.xlu0 %v1026_v61 }
 0x683   :  { %1038 = vrot.lane.b32.xlu1 %v2038_v23, %s1865_s18  ;;  %v1279_v23 = vld [vmem:[%s2217_s9] sm:$0xff] }
 0x684   :  { %v1752_v25 = vpack.c.bf16 %v1280_v24, %v1279_v23 }
 0x686   :  { %1753 = vmatprep.subr.bf16.mxu0 %v1752_v25 }
 0x687   :  { %1274 = vperm.xlu1 %1780, %v1266_v15  }
 0x6ff   :  { %v865_v63 = vpop.xlane.xlu1 %864 }
 0x700   :  { %v866_v0 = vsub.f32 %v862_v53, %v865_v63 }
 0x702   :  { %v867_v1 = vmul.f32 1.442695, %v866_v0 }
 0x703   :  { %v1028_v2 = vpop.xlane.xlu0 %1027  ;;  %v1039_v12 = vpop.permute.xlu1 %1038 }
 0x704   :  { %1797 = vpow2.f32 %v867_v1  ;;  %v1029_v3 = vsub.f32 %v1025_v59, %v1028_v2 }
 0x706   :  { %v1030_v4 = vmul.f32 1.442695, %v1029_v3 }
 0x708   :  { %1799 = vpow2.f32 %v1030_v4 }
 0x70e   :  { %v1798_v54 = vpop.eup %1797 }
 0x70f   :  { %v869_v55 = vsel %vm380_vm3, %v1798_v54, 0.0 }
 0x710   :  { %870 = vadd.xlane.f32.xlu0 %v869_v55 }
 0x712   :  { %v1800_v5 = vpop.eup %1799 }
 0x713   :  { %v1032_v6 = vsel %vm380_vm3, %v1800_v5, 0.0 }
 0x714   :  { %1033 = vadd.xlane.f32.xlu0 %v1032_v6 }
 0x72a   :  { %1269 = vperm.xlu0 %1779, %v1265_v7  }
 0x79d   :  { %v871_v8 = vpop.xlane.xlu0 %870 }
 0x79e   :  { %1801 = vrcp.f32 %v871_v8 }
 0x7a1   :  { %v1034_v9 = vpop.xlane.xlu0 %1033 }
 0x7a2   :  { %1803 = vrcp.f32 %v1034_v9 }
 0x7a8   :  { %v1802_v10 = vpop.eup %1801 }
 0x7a9   :  { %v873_v11 = vmul.f32 %v1802_v10, %v1798_v54  ;;  %v2122_v18 = vpop.permute.xlu0 %1269 }
 0x7ab   :  { %1262 = vst.msk [vmem:[#allocation4 + $0x8] sm:$0xff] %vm380_vm3, %v873_v11  ;;  %1684 = vmatmul.mubr.msk.f32.vlgmr.msra.gmra.mrb[8].mxu1 %vm380_vm3, %v873_v11 }
 0x7ac   :  { %v1804_v13 = vpop.eup %1803  ;;  %1692 = vmatpush3.msra.mxu1 %v1039_v12  ;;  %1693 = vmatprep.mubr.msk.f32.mxu1 %vm1862_vm1, %v1861_v27 }
 0x7ad   :  { %v1036_v14 = vmul.f32 %v1804_v13, %v1800_v5  ;;  %1749 = vmatprep.subr.bf16.mxu1 %v1866_v21  ;;  %v1277_v21 = vmul.f32 %v2122_v18, %v784_v20 }
 0x7af   :  { %1264 = vst.msk [vmem:[#allocation4 + $0x18] sm:$0xff] %vm380_vm3, %v1036_v14  ;;  %1694 = vmatmul.mubr.msk.f32.vlgmr.msra.gmra.mrb[10].mxu1 %vm380_vm3, %v1036_v14 }
 0x7b0   :  { %1751 = vmatpush3.bf16.msra.mxu1 %v2057_v36  ;;  %1707 = vmatprep.mubr.msk.f32.mxu1 %vm1862_vm1, %v1861_v27  ;;  %v2140_v36 = vpop.permute.xlu1 %1274 }
 0x7b1   :  { %1761 = vmatprep.subr.bf16.mxu1 %v1760_v42 }
 0x87e   :  { %v943_v17 = vpop.f32.mrb[8].mxu1 }
 0x87f   :  { %v1685_v19 = vpop.f32.mrb[9].mxu1  ;;  %1708 = vmatmul.mubr.msk.f32.vlgmr.msra.gmra.mrb[12].mxu1 %vm56_vm0, %v943_v17 }
 0x880   :  { %1763 = vmatpush3.bf16.msra.mxu1 %v1760_v42 }
 0x881   :  { %1765 = vmatprep.subr.bf16.mxu1 %v1764_v44 }
 0x882   :  { %v1110_v27 = vpop.f32.mrb[10].mxu1 }
 0x883   :  { %v1695_v22 = vpop.f32.mrb[11].mxu1  ;;  %1701 = vmatmul.mubr.msk.f32.vlgmr.msra.gmra.mrb[12].mxu0 %vm56_vm0, %v1110_v27 }
 0x884   :  { %1718 = vmatprep.mubr.msk.f32.mxu0 %vm1290_vm4, %v1277_v21  ;;  %1755 = vmatpush3.bf16.msra.mxu0 %v1752_v25 }
 0x885   :  { %1757 = vmatprep.subr.bf16.mxu0 %v1756_v29  ;;  %1767 = vmatpush3.bf16.msra.mxu1 %v1764_v44 }
 0x888   :  { %1759 = vmatpush3.bf16.msra.mxu0 %v1756_v29 }
 0x952   :  { %v1256_v31 = vpop.f32.mrb[12].mxu1 }
 0x953   :  { %v1709_v32 = vpop.f32.mrb[13].mxu1 }
 0x956   :  { %v1183_v33 = vpop.f32.mrb[12].mxu0 }
 0x957   :  { %v1257_v34 = vadd.f32 %v1256_v31, %v1183_v33  ;;  %v1702_v35 = vpop.f32.mrb[13].mxu0 }
 0x959   :  { %v1260_v37 = vadd.f32 %v1563_v16, %v1257_v34 }
 0x95b   :  { %v1278_v38 = vmul.f32 %v2140_v36, %v1260_v37 }
 0x95d   :  { %1719 = vmatmul.mubr.msk.f32.vlgmr.msra.gmra.mrb[14].mxu0 %vm1290_vm4, %v1278_v38 }
 0xa30   :  { %v1720_v46 = vpop.f32.mrb[14].mxu0 }
 0xa31   :  { %v1369_v47 = vadd.f32 %v1720_v46, %v1572_v45  ;;  %v1363_v48 = vpop.f32.mrb[15].mxu0 }
 0xa32   :  { %v1364_v49 = vadd.f32 %v1572_v45, %v1363_v48 }
 0xa34   :  { %1805 = vtanh.f32 %v1364_v49 }
 0xa35   :  { %1807 = vtanh.f32 %v1369_v47 }
 0xa3e   :  { %v1806_v50 = vpop.eup %1805 }
 0xa3f   :  { %v1808_v51 = vpop.eup %1807  ;;  %1729 = vmatprep.mubr.msk.f32.mxu1 %vm1290_vm4, %v1806_v50 }
 0xa40   :  { %1730 = vmatmul.mubr.msk.f32.vlgmr.msra.gmra.mrb[14].mxu1 %vm1290_vm4, %v1808_v51 }
 0xb13   :  { %v1731_v30 = vpop.f32.mrb[14].mxu1 }
 0xb14   :  { %v1463_v53 = vadd.f32 %v1731_v30, %v1575_v52  ;;  %v1457_v56 = vpop.f32.mrb[15].mxu1 }
 0xb15   :  { %v1458_v57 = vadd.f32 %v1575_v52, %v1457_v56 }
 0xb16   :  { %v1467_v58 = vadd.f32 %v1463_v53, %v1278_v38 }
 0xb17   :  { %v1466_v59 = vadd.f32 %v1458_v57, %v1277_v21 }
 0xb18   :  { %v1471_v60 = vsel %vm1290_vm4, %v1467_v58, 0.0 }
 0xb19   :  { %1472 = vadd.xlane.f32.xlu0 %v1471_v60  ;;  %v1468_v61 = vsel %vm1290_vm4, %v1466_v59, 0.0 }
 0xb1a   :  { %1469 = vadd.xlane.f32.xlu1 %v1468_v61 }
 0xba6   :  { %v1473_v62 = vpop.xlane.xlu0 %1472 }
 0xba7   :  { %v1476_v63 = vmul.f32 0.03125, %v1473_v62  ;;  %v1470_v0 = vpop.xlane.xlu1 %1469 }
 0xba8   :  { %v1475_v1 = vmul.f32 0.03125, %v1470_v0 }
 0xba9   :  { %v1478_v2 = vsub.f32 %v1467_v58, %v1476_v63 }
 0xbaa   :  { %v1477_v3 = vsub.f32 %v1466_v59, %v1475_v1 }
 0xbab   :  { %v1480_v55 = vmul.f32 %v1478_v2, %v1478_v2 }
 0xbac   :  { %v1479_v4 = vmul.f32 %v1477_v3, %v1477_v3 }
 0xbad   :  { %v1484_v5 = vsel %vm1290_vm4, %v1480_v55, 0.0 }
 0xbae   :  { %v1481_v54 = vsel %vm1290_vm4, %v1479_v4, 0.0 }
 0xbaf   :  { %1482 = vadd.xlane.f32.xlu1 %v1481_v54 }
 0xbb3   :  { %1485 = vadd.xlane.f32.xlu1 %v1484_v5 }
 0xbb4   :  { %1824 = shalt.err (!%p1821_p4)
}
 0xbb5   :  { %s1825_s20 = scalar_lea.hbm %s2224_s16, 512 }
 0xbb6   :  { %p1826_p5 = scmp.ne.s32.totalorder %s2224_s16, %s1825_s20  ;;  %p1829_p6 = scmp.lt.u32.totalorder %s1825_s20, %s2224_s16 }
 0xbb8   :  { %p1831_p7 = pnand %p1829_p6, %p1826_p5 }
 0xbba   :  { %1834 = shalt.err (!%p1831_p7)
}
 0xbbb   :  { %s1869_s1 = smov 128   ;;  %s1870_s22 = smov 8   ;;  %v1578_v13 = vld [vmem:[%s2221_s13] ss:$0 sm:$0xff] }
 0xbbc   :  { %1540 = dma.vmem_to_hbm [thread:$0]  %s1535_s12, 512, %s2224_s16, [#allocation5], %s1869_s1, %s1869_s1, %s1870_s22  }
 0xbbd   :  { %v1579_v15 = vld [vmem:[%s2222_s14] ss:$0 sm:$0xff]  ;;  %s1871_s16 = smov [#allocation2]  }
 0xbbe   :  { %s1522_s26 = sshll.u32 %s1871_s16, 4  ;;  %s1523_s26 = int_to_ptr.vmem [resolvable:$true] %s1522_s26 }
 0xbbf   :  { %s1835_s13 = scalar_lea.vmem %s1523_s26, 256  ;;  %p1840_p9 = scmp.lt.s32.totalorder %s1523_s26, %s1523_s26 }
 0xbc0   :  { %p1836_p8 = scmp.ne.s32.totalorder %s1523_s26, %s1835_s13  ;;  %p1841_p10 = scmp.lt.s32.totalorder %s1835_s13, %s1835_s13 }
 0xbc2   :  { %p1842_p11 = por %p1841_p10, %p1840_p9 }
 0xbc4   :  { %p1843_p12 = pnand %p1842_p11, %p1836_p8 }
 0xc3c   :  { %v1483_v6 = vpop.xlane.xlu1 %1482 }
 0xc3d   :  { %v1487_v7 = vmul.f32 0.03125, %v1483_v6 }
 0xc3f   :  { %v1489_v8 = vadd.f32 1e-05, %v1487_v7 }
 0xc40   :  { %v1486_v9 = vpop.xlane.xlu1 %1485 }
 0xc41   :  { %1809 = vrsqrt.f32 %v1489_v8  ;;  %v1488_v10 = vmul.f32 0.03125, %v1486_v9 }
 0xc43   :  { %v1490_v11 = vadd.f32 1e-05, %v1488_v10 }
 0xc45   :  { %1811 = vrsqrt.f32 %v1490_v11 }
 0xc4b   :  { %v1810_v12 = vpop.eup %1809 }
 0xc4c   :  { %v1493_v14 = vmul.f32 %v1810_v12, %v1477_v3 }
 0xc4e   :  { %v1502_v16 = vmul.f32 %v1578_v13, %v1493_v14 }
 0xc4f   :  { %v1812_v17 = vpop.eup %1811 }
 0xc50   :  { %v1494_v19 = vmul.f32 %v1812_v17, %v1478_v2  ;;  %v1511_v20 = vadd.f32 %v1579_v15, %v1502_v16 }
 0xc52   :  { %v1503_v21 = vmul.f32 %v1578_v13, %v1494_v19  ;;  %v1513_v27 = vmul.f32 %v1511_v20, %v2122_v18 }
 0xc54   :  { %v1512_v22 = vadd.f32 %v1579_v15, %v1503_v21  ;;  %1515 = vst.msk [vmem:[#allocation2] sm:$0xff] %vm1290_vm4, %v1513_v27 }
 0xc56   :  { %v1514_v23 = vmul.f32 %v1512_v22, %v2140_v36 }
 0xc58   :  { %1516 = vst.msk [vmem:[#allocation2 + $0x8] sm:$0xff] %vm1290_vm4, %v1514_v23 }
 0xc59   :  { %1846 = shalt.err (!%p1843_p12)
}
 0xc5a   :  { %s1847_s28 = scalar_lea.hbm %s2223_s15, 256 }
 0xc5b   :  { %p1848_p13 = scmp.ne.s32.totalorder %s2223_s15, %s1847_s28  ;;  %p1851_p0 = scmp.lt.u32.totalorder %s1847_s28, %s2223_s15 }
 0xc5d   :  { %p1853_p1 = pnand %p1851_p0, %p1848_p13 }
 0xc5f   :  { %1856 = shalt.err (!%p1853_p1)
}
 0xc60   :  { %1528 = dma.vmem_to_hbm [thread:$0]  %s1523_s26, 256, %s2223_s15, [#allocation3], %s1869_s1, %s1869_s1, %s1870_s22  }
 0xc61   :  { %1857 = dma.done.wait [#allocation3], 256  }
 0xc62   :  { %1858 = vsyncadd [#allocation3], 4294967040 }
 0xc63   :  { %1859 = dma.done.wait [#allocation5], 512  }
 0xc64   :  { %1860 = vsyncadd [#allocation5], 4294966784 }
 0xc65   :  { %1547 = vsyncpa [#allocation3], 1 }
 0xc66   :  { %1548 = vsyncpa [#allocation5], 1 }

</bundles_post_ra>
